<compile_context>
chip_gen: v5e
topology: v5e:2x2
jax: 0.10.0
libtpu: 0.0.40
codegen_flags: <defaults>
</compile_context>

<pallas_src>
import functools

import jax
import jax.numpy as jnp
from jax.experimental import pallas as pl
from jax.experimental.pallas import tpu as pltpu

EPS = 1e-5

_COMPILER_PARAMS = pltpu.CompilerParams(
    dimension_semantics=("parallel",),
    vmem_limit_bytes=32 * 1024 * 1024,
)


# ---------------------------------------------------------------------------
# pltpu.roll convention probe (run once, outside of jit)
# ---------------------------------------------------------------------------
def _roll_probe_kernel(x_ref, o_ref):
    o_ref[...] = pltpu.roll(x_ref[...], 1, 1)


@functools.lru_cache(maxsize=None)
def _roll_matches_jnp() -> bool:
    """True iff pltpu.roll(x, s, ax)[i] == x[i - s] (jnp.roll convention)."""
    with jax.ensure_compile_time_eval():
        x = jnp.broadcast_to(jnp.arange(128, dtype=jnp.float32), (8, 128))
        out = pl.pallas_call(
            _roll_probe_kernel,
            out_shape=jax.ShapeDtypeStruct((8, 128), jnp.float32),
        )(x)
        return bool(out[0, 0] == 127.0)


# ---------------------------------------------------------------------------
# Kernels. All activations inside a kernel are [C, HW] (channels x spatial),
# weights are [Cout, Cin] (or [9, Cout, Cin] for the 3x3 taps).
# ---------------------------------------------------------------------------
def _conv1x1_stats_kernel(x_ref, w_ref, y_ref, sum_ref, sq_ref, *, compute_dtype):
    y = jnp.dot(
        w_ref[...].astype(compute_dtype),
        x_ref[0].astype(compute_dtype),
        preferred_element_type=jnp.float32,
    )
    y_ref[0] = y
    sum_ref[0] = jnp.sum(y, axis=1, keepdims=True)
    sq_ref[0] = jnp.sum(y * y, axis=1, keepdims=True)


def _bn_relu_conv1x1_stats_kernel(x_ref, scale_ref, shift_ref, w_ref,
                                  y_ref, sum_ref, sq_ref, *, compute_dtype):
    h = jnp.maximum(x_ref[0] * scale_ref[...] + shift_ref[...], 0.0)
    y = jnp.dot(
        w_ref[...].astype(compute_dtype),
        h.astype(compute_dtype),
        preferred_element_type=jnp.float32,
    )
    y_ref[0] = y
    sum_ref[0] = jnp.sum(y, axis=1, keepdims=True)
    sq_ref[0] = jnp.sum(y * y, axis=1, keepdims=True)


def _bn_relu_conv3x3_stats_kernel(x_ref, scale_ref, shift_ref, w_ref, mask_ref,
                                  y_ref, sum_ref, sq_ref,
                                  *, compute_dtype, shifts):
    # Fused: BN+relu of the previous stage, 3x3 conv as 9 accumulated matmuls
    # over lane-rotated taps (no materialized im2col), then partial BN stats.
    h = jnp.maximum(x_ref[0] * scale_ref[...] + shift_ref[...], 0.0)  # [Cin, HW] f32
    c_out = w_ref.shape[1]
    hw = h.shape[1]
    acc = jnp.zeros((c_out, hw), jnp.float32)
    for t in range(9):
        tap = h if shifts[t] == 0 else pltpu.roll(h, shifts[t], 1)
        tap = (tap * mask_ref[t]).astype(compute_dtype)       # zero out-of-image taps
        acc = acc + jnp.dot(
            w_ref[t].astype(compute_dtype), tap,
            preferred_element_type=jnp.float32,
        )
    y_ref[0] = acc
    sum_ref[0] = jnp.sum(acc, axis=1, keepdims=True)
    sq_ref[0] = jnp.sum(acc * acc, axis=1, keepdims=True)


def _bn_add_relu_kernel(y_ref, res_ref, scale_ref, shift_ref, o_ref):
    o_ref[0] = jnp.maximum(
        y_ref[0] * scale_ref[...] + shift_ref[...] + res_ref[0], 0.0)


# ---------------------------------------------------------------------------
# Wrapper helpers
# ---------------------------------------------------------------------------
def _bn_fold(sum_nc1, sq_nc1, gamma, beta, m):
    """Fold batch statistics + affine params into (scale, shift), each [C, 1]."""
    total = jnp.sum(sum_nc1, axis=0)[:, 0]
    total_sq = jnp.sum(sq_nc1, axis=0)[:, 0]
    mean = total / m
    var = jnp.maximum(total_sq / m - mean * mean, 0.0)
    scale = gamma * jax.lax.rsqrt(var + EPS)
    shift = beta - mean * scale
    return (scale.reshape(-1, 1).astype(jnp.float32),
            shift.reshape(-1, 1).astype(jnp.float32))


def _conv3x3_tap_tables(h, w):
    """Static lane shifts (for pltpu.roll) and validity masks for the 9 taps."""
    hw = h * w
    roll_fwd = _roll_matches_jnp()
    ii = jnp.arange(h).reshape(h, 1)
    jj = jnp.arange(w).reshape(1, w)
    shifts, masks = [], []
    for dy in (-1, 0, 1):
        for dx in (-1, 0, 1):
            s = dy * w + dx                      # tap[p] = h_flat[p + s] (when valid)
            shifts.append(((-s) if roll_fwd else s) % hw)
            valid = ((ii + dy >= 0) & (ii + dy < h) &
                     (jj + dx >= 0) & (jj + dx < w))
            masks.append(valid.reshape(1, hw))
    mask_arr = jnp.stack(masks, axis=0).astype(jnp.float32)   # [9, 1, HW]
    return tuple(shifts), mask_arr


def bottleneck_forward(x_nchw, params):
    """Forward pass of the default (identity-projection) BottleneckBlock."""
    w1, g1, b1, w2, g2, b2, w3, g3, b3 = params
    n, c4, h, w = x_nchw.shape
    c = w1.shape[0]
    hw = h * w
    m = n * hw

    # bf16 matmul operands only when the channel counts can feed the MXU
    # (v6e/v7x); f32 otherwise (tiny test channels; v5e has no bf16 VPU path).
    compute_dtype = jnp.bfloat16 if min(c, c4) >= 64 else jnp.float32

    # NCHW viewed as [N, C, H*W]: spatial axis lane-dense, no transpose needed.
    x_flat = x_nchw.reshape(n, c4, hw)

    w1_mat = w1[:, :, 0, 0]                                     # [C, 4C]
    w3_mat = w3[:, :, 0, 0]                                     # [4C, C]
    w2_taps = jnp.transpose(w2, (2, 3, 0, 1)).reshape(9, c, c)  # [9, Cout, Cin]
    shifts, tap_masks = _conv3x3_tap_tables(h, w)

    def img_spec(channels):
        return pl.BlockSpec((1, channels, hw), lambda i: (i, 0, 0))

    def vec_spec(channels):
        return pl.BlockSpec((channels, 1), lambda i: (0, 0))

    def stat_specs(channels):
        return (
            pl.BlockSpec((1, channels, hw), lambda i: (i, 0, 0)),
            pl.BlockSpec((1, channels, 1), lambda i: (i, 0, 0)),
            pl.BlockSpec((1, channels, 1), lambda i: (i, 0, 0)),
        )

    def stat_shapes(channels):
        return (
            jax.ShapeDtypeStruct((n, channels, hw), jnp.float32),
            jax.ShapeDtypeStruct((n, channels, 1), jnp.float32),
            jax.ShapeDtypeStruct((n, channels, 1), jnp.float32),
        )

    # ---- stage 1: conv1x1 (4C -> C) + partial BN1 stats --------------------
    y1, s1, q1 = pl.pallas_call(
        functools.partial(_conv1x1_stats_kernel, compute_dtype=compute_dtype),
        grid=(n,),
        in_specs=[img_spec(c4), pl.BlockSpec((c, c4), lambda i: (0, 0))],
        out_specs=stat_specs(c),
        out_shape=stat_shapes(c),
        compiler_params=_COMPILER_PARAMS,
    )(x_flat, w1_mat)
    scale1, shift1 = _bn_fold(s1, q1, g1, b1, m)

    # ---- stage 2: BN1+relu fused into conv3x3 (C -> C) + partial BN2 stats --
    y2, s2, q2 = pl.pallas_call(
        functools.partial(_bn_relu_conv3x3_stats_kernel,
                          compute_dtype=compute_dtype, shifts=shifts),
        grid=(n,),
        in_specs=[
            img_spec(c),
            vec_spec(c),
            vec_spec(c),
            pl.BlockSpec((9, c, c), lambda i: (0, 0, 0)),
            pl.BlockSpec((9, 1, hw), lambda i: (0, 0, 0)),
        ],
        out_specs=stat_specs(c),
        out_shape=stat_shapes(c),
        compiler_params=_COMPILER_PARAMS,
    )(y1, scale1, shift1, w2_taps, tap_masks)
    scale2, shift2 = _bn_fold(s2, q2, g2, b2, m)

    # ---- stage 3: BN2+relu fused into conv1x1 (C -> 4C) + partial BN3 stats -
    y3, s3, q3 = pl.pallas_call(
        functools.partial(_bn_relu_conv1x1_stats_kernel,
                          compute_dtype=compute_dtype),
        grid=(n,),
        in_specs=[
            img_spec(c),
            vec_spec(c),
            vec_spec(c),
            pl.BlockSpec((c4, c), lambda i: (0, 0)),
        ],
        out_specs=stat_specs(c4),
        out_shape=stat_shapes(c4),
        compiler_params=_COMPILER_PARAMS,
    )(y2, scale2, shift2, w3_mat)
    scale3, shift3 = _bn_fold(s3, q3, g3, b3, m)

    # ---- stage 4: BN3 + identity residual + relu (aliases y3 -> out) -------
    out_flat = pl.pallas_call(
        _bn_add_relu_kernel,
        grid=(n,),
        in_specs=[img_spec(c4), img_spec(c4), vec_spec(c4), vec_spec(c4)],
        out_specs=img_spec(c4),
        out_shape=jax.ShapeDtypeStruct((n, c4, hw), jnp.float32),
        input_output_aliases={0: 0},
        compiler_params=_COMPILER_PARAMS,
    )(y3, x_flat, scale3, shift3)

    return out_flat.reshape(n, c4, h, w)


# ---------------------------------------------------------------------------
# Pure-JAX reference (mirrors the PyTorch forward, NCHW)
# ---------------------------------------------------------------------------
def ref_forward(x, params):
    w1, g1, b1, w2, g2, b2, w3, g3, b3 = params

    def conv_bn(hx, wk, g, b, padding):
        y = jax.lax.conv_general_dilated(
            hx, wk, (1, 1), padding,
            dimension_numbers=("NCHW", "OIHW", "NCHW"),
            precision=jax.lax.Precision.HIGHEST)
        mean = y.mean(axis=(0, 2, 3), keepdims=True)
        var = ((y - mean) ** 2).mean(axis=(0, 2, 3), keepdims=True)
        y = (y - mean) / jnp.sqrt(var + EPS)
        return y * g.reshape(1, -1, 1, 1) + b.reshape(1, -1, 1, 1)

    out = jax.nn.relu(conv_bn(x, w1, g1, b1, "VALID"))
    out = jax.nn.relu(conv_bn(out, w2, g2, b2, [(1, 1), (1, 1)]))
    out = conv_bn(out, w3, g3, b3, "VALID")
    return jax.nn.relu(out + x)


if __name__ == "__main__":
    in_channels = 4
    out_channels = in_channels * 4               # BottleneckBlock.in_out_ratio = 4
    N, H, W = 2, 16, 16

    ks = jax.random.split(jax.random.PRNGKey(0), 10)
    x = jax.random.normal(ks[0], (N, out_channels, H, W), jnp.float32)

    # deterministic parameter init (shapes per module __init__, OIHW like PyTorch)
    w1 = 0.1 * jax.random.normal(ks[1], (in_channels, out_channels, 1, 1), jnp.float32)
    g1 = 1.0 + 0.1 * jax.random.normal(ks[2], (in_channels,), jnp.float32)
    b1 = 0.1 * jax.random.normal(ks[3], (in_channels,), jnp.float32)
    w2 = 0.1 * jax.random.normal(ks[4], (in_channels, in_channels, 3, 3), jnp.float32)
    g2 = 1.0 + 0.1 * jax.random.normal(ks[5], (in_channels,), jnp.float32)
    b2 = 0.1 * jax.random.normal(ks[6], (in_channels,), jnp.float32)
    w3 = 0.1 * jax.random.normal(ks[7], (out_channels, in_channels, 1, 1), jnp.float32)
    g3 = 1.0 + 0.1 * jax.random.normal(ks[8], (out_channels,), jnp.float32)
    b3 = 0.1 * jax.random.normal(ks[9], (out_channels,), jnp.float32)
    params = (w1, g1, b1, w2, g2, b2, w3, g3, b3)

    _roll_matches_jnp()                          # prime the probe outside of jit
    fwd = jax.jit(bottleneck_forward)

    out = jax.block_until_ready(fwd(x, params))
    ref = jax.block_until_ready(ref_forward(x, params))

    assert out.shape == (N, out_channels, H, W), out.shape
    max_err = float(jnp.max(jnp.abs(out - ref)))
    assert max_err < 1e-2, f"mismatch vs reference: max_err={max_err}"
    print("KERNEL_OK")
</pallas_src>

<mosaic_0001>
module attributes {stable_mosaic.version = 11 : i64} {
  func.func @_roll_probe_kernel(%arg0: memref<8x128xf32, #tpu.memory_space<vmem>>, %arg1: memref<8x128xf32, #tpu.memory_space<vmem>>) attributes {dimension_semantics = [], scalar_prefetch = 0 : i64, scratch_operands = 0 : i64, tpu.core_type = #tpu.core_type<tc>} {
    %c0 = arith.constant 0 : index
    %c0_0 = arith.constant 0 : index
    %0 = vector.load %arg0[%c0, %c0_0] : memref<8x128xf32, #tpu.memory_space<vmem>>, vector<8x128xf32>
    %c1_i32 = arith.constant 1 : i32
    %1 = tpu.dynamic_rotate %0 by %c1_i32 dim 1 : vector<8x128xf32>, i32 -> vector<8x128xf32>
    %c0_1 = arith.constant 0 : index
    %c0_2 = arith.constant 0 : index
    %2 = vector.load %arg1[%c0_1, %c0_2] : memref<8x128xf32, #tpu.memory_space<vmem>>, vector<8x128xf32>
    tpu.vector_store %arg1[%c0_1, %c0_2], %1 {strides = array<i32>} : memref<8x128xf32, #tpu.memory_space<vmem>>, vector<8x128xf32>,
    return
  }
}

</mosaic_0001>

<bundles_post_ra>
// kernel: tpu_custom_call.1
= control target key start
LH: loop header
LB: loop body
LE: loop exit
PB: predicated region body
PF: predicated region fallthrough
CT: control target
= control target key end

     0   :  { %6 = vsyncpa [#allocation3], 0  ;;  %s118_s0 = inlined_call_operand.hbm [shape: f32[8,128], index: 0, kind: input, shape index: {}]   ;;  %s119_s1 = inlined_call_operand.hbm [shape: f32[8,128], index: 1, kind: output, shape index: {}]  }
   0x1   :  { %7 = vsyncpa [#allocation4], 0  ;;  %s13_s8 = sshll.u32 %s118_s0, 4  ;;  %s99_s9 = smov [#allocation2]   ;;  %s14_s8 = int_to_ptr.hbm [resolvable:$true] %s13_s8 }
   0x2   :  { %s15_s10 = sshll.u32 %s99_s9, 4  ;;  %s16_s10 = int_to_ptr.vmem [resolvable:$true] %s15_s10 }
   0x3   :  { %18 = dma.hbm_to_vmem [thread:$0]  %s14_s8, 128, %s16_s10, [#allocation3]  }
   0x4   :  { %95 = dma.done.wait [#allocation3], 128  }
   0x5   :  { %96 = vsyncadd [#allocation3], 4294967168  ;;  %v23_v0 = vld [vmem:[#allocation2] sm:$0xff]  ;;  %s100_s11 = smov 1   ;;  %s101_s12 = smov [#allocation5]  }
   0x6   :  { %24 = vrot.lane.b32.xlu0 %v23_v0, %s100_s11  ;;  %s32_s13 = sshll.u32 %s101_s12, 4  ;;  %s34_s16 = sshll.u32 %s119_s1, 4  ;;  %s33_s13 = int_to_ptr.vmem [resolvable:$true] %s32_s13  ;;  %s35_s16 = int_to_ptr.hbm [resolvable:$true] %s34_s16 }
  0x78   :  { %v25_v1 = vpop.permute.xlu0 %24 }
  0x79   :  { %26 = vst [vmem:[#allocation5] sm:$0xff] %v25_v1 }
  0x7a   :  { %37 = dma.vmem_to_hbm [thread:$0]  %s33_s13, 128, %s35_s16, [#allocation4]  }
  0x7b   :  { %97 = dma.done.wait [#allocation4], 128  }
  0x7c   :  { %98 = vsyncadd [#allocation4], 4294967168 }
  0x7d   :  { %42 = vsyncpa [#allocation3], 1 }
  0x7e   :  { %43 = vsyncpa [#allocation4], 1 }

</bundles_post_ra>
